<compile_context>
chip_gen: v5e
topology: v5e:2x2
jax: 0.10.0
libtpu: 0.0.40
codegen_flags: <defaults>
</compile_context>

<pallas_src>
import functools

import numpy as np
import jax
import jax.numpy as jnp
from jax.experimental import pallas as pl
from jax.experimental.pallas import tpu as pltpu


# ---------------------------------------------------------------------------
# Static matrix builders (constant setup — glue, not data compute)
# ---------------------------------------------------------------------------
def _adaptive_pool_matrix(out_size: int, in_size: int) -> np.ndarray:
    """(out_size, in_size) matrix replicating nn.AdaptiveAvgPool2d binning."""
    P = np.zeros((out_size, in_size), np.float32)
    for i in range(out_size):
        start = (i * in_size) // out_size
        end = -((-(i + 1) * in_size) // out_size)  # ceil((i+1)*in/out)
        P[i, start:end] = 1.0 / (end - start)
    return P


def _bilinear_up_matrix(out_size: int, in_size: int) -> np.ndarray:
    """(out_size, in_size) matrix for F.interpolate(bilinear, align_corners=True)."""
    A = np.zeros((out_size, in_size), np.float32)
    if in_size == 1 or out_size == 1:  # align_corners edge cases
        A[:, 0] = 1.0
        return A
    scale = (in_size - 1) / (out_size - 1)
    for y in range(out_size):
        src = y * scale
        i0 = min(int(np.floor(src)), in_size - 1)
        i1 = min(i0 + 1, in_size - 1)
        frac = src - i0
        A[y, i0] += 1.0 - frac
        A[y, i1] += frac
    return A


# ---------------------------------------------------------------------------
# Sizing helpers (generation-aware)
# ---------------------------------------------------------------------------
def _vmem_cap_bytes() -> int:
    try:
        return int(pltpu.get_tpu_info().vmem_capacity_bytes)
    except Exception:
        return 64 * 1024 * 1024  # conservative (v7x per-TensorCore)


def _largest_divisor_leq(n: int, cap: int) -> int:
    for c in range(min(n, cap), 0, -1):
        if n % c == 0:
            return c
    return n


def _pick_hw_tile(HW: int, per_col_bytes: int, budget_bytes: int,
                  max_tile: int = 2048) -> int:
    """Largest HW tile (multiple of 128 dividing HW) whose per-step working set
    fits the budget; falls back to the full extent when HW isn't 128-aligned."""
    if HW % 128 != 0:
        return HW  # legal full-extent block (masked stores, still correct)
    max_cols = max(128, int(budget_bytes // max(per_col_bytes, 1)))
    t = min(HW, max_tile, (max_cols // 128) * 128)
    t = max(t, 128)
    while t > 128 and HW % t != 0:
        t -= 128
    return t if HW % t == 0 else HW


def _vmem_limit(needed_bytes: int, cap_bytes: int) -> int:
    limit = max(int(needed_bytes) + (8 << 20), 32 << 20)
    return int(min(limit, max(cap_bytes - (4 << 20), 32 << 20), 128 << 20))


# ---------------------------------------------------------------------------
# Kernel A: adaptive pool (HW-tiled, accumulated in VMEM) + 1x1 conv
# ---------------------------------------------------------------------------
def _pool_conv_kernel(x_ref, poolT_ref, w_ref, mask_ref, ct_ref, pT_acc):
    # x_ref    : (C, tHW)   input tile (caller dtype, possibly bf16)
    # poolT_ref: (tHW, Rp)  pooling factor tile (f32)
    # w_ref    : (SF, C)    stacked 1x1 conv weights (resident)
    # mask_ref : (SF, Rp)   block-diagonal stage mask (resident)
    # ct_ref   : (SF, Rp)   tiny per-batch conv-on-pooled output (resident)
    # pT_acc   : (C, Rp)    f32 pooled accumulator (VMEM scratch)
    hw = pl.program_id(1)

    @pl.when(hw == 0)
    def _():
        pT_acc[...] = jnp.zeros_like(pT_acc)

    pT_acc[...] += jnp.dot(x_ref[...], poolT_ref[...],
                           preferred_element_type=jnp.float32)

    @pl.when(hw == pl.num_programs(1) - 1)
    def _():
        cT = jnp.dot(w_ref[...], pT_acc[...],
                     preferred_element_type=jnp.float32)
        ct_ref[...] = (cT * mask_ref[...]).astype(ct_ref.dtype)


# ---------------------------------------------------------------------------
# Kernel B: bilinear upsample of all stages (HW-tiled) + pass-through concat
# ---------------------------------------------------------------------------
def _upsample_concat_kernel(ct_ref, upT_ref, x_ref, out_ref, *, sf, sf_chunk):
    # ct_ref : (SF, Rp)       per-batch conv-on-pooled (f32, resident)
    # upT_ref: (Rp, tHW)      upsample factor tile (f32)
    # x_ref  : (C, tHW)       input tile (pass-through)
    # out_ref: (SF + C, tHW)  lane-dense output tile: [priors ; feats]
    up = upT_ref[...]
    # Chunk the (SF, tHW) priors matmul + store so the f32 temporary stays
    # small (VMEM / vreg pressure on v7x), writing each chunk straight into
    # the lane-dense output tile.
    for start in range(0, sf, sf_chunk):
        rows = pl.ds(start, sf_chunk)
        out_ref[rows, :] = jnp.dot(
            ct_ref[rows, :], up, preferred_element_type=jnp.float32
        ).astype(out_ref.dtype)
    # torch.cat(priors + [feats], 1): pass the input features through.
    out_ref[pl.ds(sf, x_ref.shape[0]), :] = x_ref[...].astype(out_ref.dtype)


# ---------------------------------------------------------------------------
# Wrapper
# ---------------------------------------------------------------------------
def psp_module_forward(feats_nchw, conv_weights, sizes=(1, 2, 3, 6), *,
                       hw_tile=None):
    """feats_nchw: (N, C, H, W); conv_weights: (S, F, C) == Conv2d weight[..., 0, 0]."""
    N, C, H, W = feats_nchw.shape
    S = len(sizes)
    F = conv_weights.shape[1]
    HW = H * W
    SF = S * F
    R = sum(s * s for s in sizes)
    Rp = ((R + 127) // 128) * 128          # pad stage axis to lane width

    dtype = feats_nchw.dtype
    dsize = np.dtype(dtype).itemsize

    # Small factored spatial transforms, f32 (keeps adaptive-average /
    # bilinear weights exact); padded columns/rows are zero so they are inert.
    poolT = np.zeros((HW, Rp), np.float32)
    upT = np.zeros((Rp, HW), np.float32)
    mask = np.zeros((SF, Rp), np.float32)
    off = 0
    for si, s in enumerate(sizes):
        Pr = _adaptive_pool_matrix(s, H)
        Pc = _adaptive_pool_matrix(s, W)
        Ar = _bilinear_up_matrix(H, s)
        Ac = _bilinear_up_matrix(W, s)
        poolT[:, off:off + s * s] = np.kron(Pr, Pc).T      # (HW, s^2)
        upT[off:off + s * s, :] = np.kron(Ar, Ac).T        # (s^2, HW)
        mask[si * F:(si + 1) * F, off:off + s * s] = 1.0
        off += s * s
    poolT = jnp.asarray(poolT)
    upT = jnp.asarray(upT)
    mask = jnp.asarray(mask)

    # Operands move in the caller's dtype (bf16 halves the HBM traffic of this
    # memory-bound kernel); accumulation stays f32 in the kernels.
    w = conv_weights.reshape(SF, C).astype(dtype)          # (SF, C)
    x = feats_nchw.reshape(N, C, HW)                       # NCHW -> (N, C, HW)

    # ---- generation-aware tile / vmem sizing ------------------------------
    cap = _vmem_cap_bytes()
    sf_chunk = _largest_divisor_leq(SF, 512)

    # Per-HW-column and fixed (resident) VMEM bytes, double-buffering counted.
    per_col_A = 2 * C * dsize + 2 * Rp * 4
    fixed_A = 2 * SF * C * dsize + 2 * SF * Rp * 4 + C * Rp * 4 + 2 * SF * Rp * 4
    per_col_B = 2 * (SF + C) * dsize + 2 * C * dsize + 2 * Rp * 4 + sf_chunk * 4
    fixed_B = 2 * SF * Rp * 4

    if hw_tile is None:
        budget = max(cap // 2 - max(fixed_A, fixed_B), 1 << 20)
        tHW = _pick_hw_tile(HW, max(per_col_A, per_col_B), budget)
    else:
        tHW = int(hw_tile)
    assert HW % tHW == 0 and (tHW == HW or tHW % 128 == 0), (HW, tHW)
    n_hw = HW // tHW

    vmem_A = _vmem_limit(fixed_A + per_col_A * tHW, cap)
    vmem_B = _vmem_limit(fixed_B + per_col_B * tHW, cap)

    # ---- Kernel A: pool + 1x1 conv -> tiny (N, SF, Rp) --------------------
    ct = pl.pallas_call(
        _pool_conv_kernel,
        out_shape=jax.ShapeDtypeStruct((N, SF, Rp), jnp.float32),
        grid_spec=pltpu.PrefetchScalarGridSpec(
            num_scalar_prefetch=0,
            grid=(N, n_hw),
            in_specs=[
                pl.BlockSpec((None, C, tHW), lambda n, h: (n, 0, h)),   # x tile
                pl.BlockSpec((tHW, Rp), lambda n, h: (h, 0)),           # poolT tile
                pl.BlockSpec((SF, C), lambda n, h: (0, 0)),             # w resident
                pl.BlockSpec((SF, Rp), lambda n, h: (0, 0)),            # mask resident
            ],
            out_specs=pl.BlockSpec((None, SF, Rp), lambda n, h: (n, 0, 0)),
            scratch_shapes=[pltpu.VMEM((C, Rp), jnp.float32)],
        ),
        compiler_params=pltpu.CompilerParams(
            dimension_semantics=("parallel", "arbitrary"),
            vmem_limit_bytes=vmem_A,
        ),
        cost_estimate=pl.CostEstimate(
            flops=int(2 * N * (C * HW * Rp + SF * C * Rp)),
            transcendentals=0,
            bytes_accessed=int(N * C * HW * dsize + HW * Rp * 4
                               + SF * C * dsize + SF * Rp * 4
                               + N * SF * Rp * 4),
        ),
    )(x, poolT, w, mask)

    # ---- Kernel B: upsample + concat -> (N, SF+C, HW) ---------------------
    up_kernel = functools.partial(_upsample_concat_kernel, sf=SF,
                                  sf_chunk=sf_chunk)
    out = pl.pallas_call(
        up_kernel,
        out_shape=jax.ShapeDtypeStruct((N, SF + C, HW), dtype),
        grid_spec=pltpu.PrefetchScalarGridSpec(
            num_scalar_prefetch=0,
            grid=(N, n_hw),
            in_specs=[
                pl.BlockSpec((None, SF, Rp), lambda n, h: (n, 0, 0)),   # cT resident / batch
                pl.BlockSpec((Rp, tHW), lambda n, h: (0, h)),           # upT tile
                pl.BlockSpec((None, C, tHW), lambda n, h: (n, 0, h)),   # x tile (pass-through)
            ],
            out_specs=pl.BlockSpec((None, SF + C, tHW), lambda n, h: (n, 0, h)),
        ),
        compiler_params=pltpu.CompilerParams(
            dimension_semantics=("parallel", "parallel"),
            vmem_limit_bytes=vmem_B,
        ),
        cost_estimate=pl.CostEstimate(
            flops=int(2 * N * SF * Rp * HW),
            transcendentals=0,
            bytes_accessed=int(N * ((SF + C) * HW * dsize + C * HW * dsize
                                    + Rp * HW * 4 + SF * Rp * 4)),
        ),
    )(ct, upT, x)

    # (N, SF + C, HW) -> (N, SF + C, H, W): free reshape; channel order is
    # [stage(1), stage(2), stage(3), stage(6), feats] as in the reference.
    return out.reshape(N, SF + C, H, W)


if __name__ == "__main__":
    key = jax.random.PRNGKey(0)
    k_x, k_w = jax.random.split(key)

    N, C, H, W = 2, 4, 16, 16          # small NCHW input (features=C)
    F = 32                             # out_features (small stand-in for 512)
    sizes = (1, 2, 3, 6)

    feats = jax.random.normal(k_x, (N, C, H, W), dtype=jnp.float32)
    # Deterministic Conv2d(C, F, 1, bias=False) weights per stage: (S, F, C)
    conv_w = 0.05 * jax.random.normal(k_w, (len(sizes), F, C), dtype=jnp.float32)

    # hw_tile=128 forces a 2-tile HW grid so the pooled-accumulator / tiled
    # upsample path (the production code path) is exercised even at toy shapes.
    out = psp_module_forward(feats, conv_w, sizes, hw_tile=128)
    jax.block_until_ready(out)

    expected_channels = len(sizes) * F + C
    assert out.shape == (N, expected_channels, H, W), out.shape
    assert out.dtype == jnp.float32

    # Independent pure-JAX reference (einsum on NCHW; no kron/flatten path).
    def reference(feats, conv_w, sizes):
        outs = []
        _, _, h, w = feats.shape
        for si, s in enumerate(sizes):
            Pr = jnp.asarray(_adaptive_pool_matrix(s, h))
            Pc = jnp.asarray(_adaptive_pool_matrix(s, w))
            Ar = jnp.asarray(_bilinear_up_matrix(h, s))
            Ac = jnp.asarray(_bilinear_up_matrix(w, s))
            pooled = jnp.einsum('ih,jw,nchw->ncij', Pr, Pc, feats)
            conv = jnp.einsum('fc,ncij->nfij', conv_w[si], pooled)
            outs.append(jnp.einsum('hi,wj,nfij->nfhw', Ar, Ac, conv))
        outs.append(feats)
        return jnp.concatenate(outs, axis=1)

    ref = reference(feats, conv_w, sizes)
    np.testing.assert_allclose(np.asarray(out), np.asarray(ref),
                               rtol=1e-4, atol=1e-4)

    # bf16 operand-feeding path (the production configuration: halves the HBM
    # traffic of this memory-bound kernel); factors/accumulation stay f32.
    out_bf16 = psp_module_forward(feats.astype(jnp.bfloat16),
                                  conv_w.astype(jnp.bfloat16), sizes)
    jax.block_until_ready(out_bf16)
    assert out_bf16.shape == (N, expected_channels, H, W)
    assert out_bf16.dtype == jnp.bfloat16
    np.testing.assert_allclose(np.asarray(out_bf16, dtype=np.float32),
                               np.asarray(ref), rtol=1e-1, atol=1e-1)

    print("KERNEL_OK")
</pallas_src>

<mosaic_0001>
module attributes {stable_mosaic.version = 11 : i64} {
  func.func @_pool_conv_kernel(%arg0: i32, %arg1: i32, %arg2: memref<1x4x128xf32, #tpu.memory_space<vmem>>, %arg3: memref<128x128xf32, #tpu.memory_space<vmem>>, %arg4: memref<128x4xf32, #tpu.memory_space<vmem>>, %arg5: memref<128x128xf32, #tpu.memory_space<vmem>>, %arg6: memref<1x128x128xf32, #tpu.memory_space<vmem>>, %arg7: memref<4x128xf32, #tpu.memory_space<vmem>>) attributes {dimension_semantics = [#tpu.dimension_semantics<parallel>, #tpu.dimension_semantics<arbitrary>], iteration_bounds = array<i64: 2, 2>, scalar_prefetch = 0 : i64, scratch_operands = 1 : i64, tpu.core_type = #tpu.core_type<tc>, window_params = [{transform_indices = @transform_0, window_bounds = array<i64: 1, 4, 128>}, {transform_indices = @transform_1, window_bounds = array<i64: 128, 128>}, {pipeline_mode = #tpu.pipeline_mode<synchronous>, transform_indices = @transform_2, window_bounds = array<i64: 128, 4>}, {pipeline_mode = #tpu.pipeline_mode<synchronous>, transform_indices = @transform_3, window_bounds = array<i64: 128, 128>}, {transform_indices = @transform_4, window_bounds = array<i64: 1, 128, 128>}]} {
    %c0_i32 = arith.constant 0 : i32
    %0 = arith.cmpi eq, %arg1, %c0_i32 : i32
    %1 = arith.extui %0 : i1 to i32
    %c0_i32_0 = arith.constant 0 : i32
    %2 = arith.cmpi ne, %1, %c0_i32_0 : i32
    scf.if %2 {
      %cst_10 = arith.constant 0.000000e+00 : f32
      %13 = vector.broadcast %cst_10 : f32 to vector<4x128xf32>
      %c0_11 = arith.constant 0 : index
      %c0_12 = arith.constant 0 : index
      %14 = vector.load %arg7[%c0_11, %c0_12] : memref<4x128xf32, #tpu.memory_space<vmem>>, vector<4x128xf32>
      tpu.vector_store %arg7[%c0_11, %c0_12], %13 {strides = array<i32>} : memref<4x128xf32, #tpu.memory_space<vmem>>, vector<4x128xf32>,
    } else {
    }
    %c0 = arith.constant 0 : index
    %c0_1 = arith.constant 0 : index
    %3 = vector.load %arg7[%c0, %c0_1] : memref<4x128xf32, #tpu.memory_space<vmem>>, vector<4x128xf32>
    %c0_2 = arith.constant 0 : index
    %c0_3 = arith.constant 0 : index
    %c0_4 = arith.constant 0 : index
    %4 = vector.load %arg2[%c0_2, %c0_3, %c0_4] : memref<1x4x128xf32, #tpu.memory_space<vmem>>, vector<1x4x128xf32>
    %5 = vector.shape_cast %4 : vector<1x4x128xf32> to vector<4x128xf32>
    %c0_5 = arith.constant 0 : index
    %c0_6 = arith.constant 0 : index
    %6 = vector.load %arg3[%c0_5, %c0_6] : memref<128x128xf32, #tpu.memory_space<vmem>>, vector<128x128xf32>
    %cst = arith.constant dense<0.000000e+00> : vector<4x128xf32>
    %7 = tpu.matmul %5, %6, %cst {dimension_numbers = #tpu.dot_dimension_numbers<[1], [0], [0], [1], [0, 0, 1, 1], [], []>} : vector<4x128xf32>, vector<128x128xf32>, vector<4x128xf32> -> vector<4x128xf32>
    %8 = arith.addf %3, %7 : vector<4x128xf32>
    %c0_7 = arith.constant 0 : index
    %c0_8 = arith.constant 0 : index
    %9 = vector.load %arg7[%c0_7, %c0_8] : memref<4x128xf32, #tpu.memory_space<vmem>>, vector<4x128xf32>
    tpu.vector_store %arg7[%c0_7, %c0_8], %8 {strides = array<i32>} : memref<4x128xf32, #tpu.memory_space<vmem>>, vector<4x128xf32>,
    %c1_i32 = arith.constant 1 : i32
    %10 = arith.cmpi eq, %arg1, %c1_i32 : i32
    %11 = arith.extui %10 : i1 to i32
    %c0_i32_9 = arith.constant 0 : i32
    %12 = arith.cmpi ne, %11, %c0_i32_9 : i32
    scf.if %12 {
      %c0_10 = arith.constant 0 : index
      %c0_11 = arith.constant 0 : index
      %13 = vector.load %arg4[%c0_10, %c0_11] : memref<128x4xf32, #tpu.memory_space<vmem>>, vector<128x4xf32>
      %c0_12 = arith.constant 0 : index
      %c0_13 = arith.constant 0 : index
      %14 = vector.load %arg7[%c0_12, %c0_13] : memref<4x128xf32, #tpu.memory_space<vmem>>, vector<4x128xf32>
      %cst_14 = arith.constant dense<0.000000e+00> : vector<128x128xf32>
      %15 = tpu.matmul %13, %14, %cst_14 {dimension_numbers = #tpu.dot_dimension_numbers<[1], [0], [0], [1], [0, 0, 1, 1], [], []>} : vector<128x4xf32>, vector<4x128xf32>, vector<128x128xf32> -> vector<128x128xf32>
      %c0_15 = arith.constant 0 : index
      %c0_16 = arith.constant 0 : index
      %16 = vector.load %arg5[%c0_15, %c0_16] : memref<128x128xf32, #tpu.memory_space<vmem>>, vector<128x128xf32>
      %17 = arith.mulf %15, %16 : vector<128x128xf32>
      %c0_17 = arith.constant 0 : index
      %c0_18 = arith.constant 0 : index
      %c0_19 = arith.constant 0 : index
      %18 = vector.load %arg6[%c0_17, %c0_18, %c0_19] : memref<1x128x128xf32, #tpu.memory_space<vmem>>, vector<1x128x128xf32>
      %19 = vector.shape_cast %18 : vector<1x128x128xf32> to vector<128x128xf32>
      %20 = vector.shape_cast %17 : vector<128x128xf32> to vector<1x128x128xf32>
      tpu.vector_store %arg6[%c0_17, %c0_18, %c0_19], %20 {strides = array<i32>} : memref<1x128x128xf32, #tpu.memory_space<vmem>>, vector<1x128x128xf32>,
    } else {
    }
    return
  }
  func.func @transform_0(%arg0: i32, %arg1: i32) -> (i32, i32, i32) {
    %c0_i32 = arith.constant 0 : i32
    %c0_i32_0 = arith.constant 0 : i32
    return %arg0, %c0_i32, %arg1 : i32, i32, i32
  }
  func.func @transform_1(%arg0: i32, %arg1: i32) -> (i32, i32) {
    %c0_i32 = arith.constant 0 : i32
    %c0_i32_0 = arith.constant 0 : i32
    return %arg1, %c0_i32 : i32, i32
  }
  func.func @transform_2(%arg0: i32, %arg1: i32) -> (i32, i32) {
    %c0_i32 = arith.constant 0 : i32
    %c0_i32_0 = arith.constant 0 : i32
    %c0_i32_1 = arith.constant 0 : i32
    return %c0_i32, %c0_i32_0 : i32, i32
  }
  func.func @transform_3(%arg0: i32, %arg1: i32) -> (i32, i32) {
    %c0_i32 = arith.constant 0 : i32
    %c0_i32_0 = arith.constant 0 : i32
    %c0_i32_1 = arith.constant 0 : i32
    return %c0_i32, %c0_i32_0 : i32, i32
  }
  func.func @transform_4(%arg0: i32, %arg1: i32) -> (i32, i32, i32) {
    %c0_i32 = arith.constant 0 : i32
    %c0_i32_0 = arith.constant 0 : i32
    %c0_i32_1 = arith.constant 0 : i32
    return %arg0, %c0_i32, %c0_i32_0 : i32, i32, i32
  }
}

</mosaic_0001>

<bundles_post_ra>
// kernel: tpu_custom_call.1
= control target key start
LH: loop header
LB: loop body
LE: loop exit
PB: predicated region body
PF: predicated region fallthrough
CT: control target
= control target key end

     0   :  { %s1464_s0 = inlined_call_operand.hbm [shape: f32[2,4,256], index: 0, kind: input, shape index: {}]   ;;  %s1465_s1 = inlined_call_operand.hbm [shape: f32[256,128], index: 1, kind: input, shape index: {}]   ;;  %s1466_s2 = inlined_call_operand.vmem [shape: f32[128,4], index: 2, kind: input, shape index: {}]   ;;  %s1467_s3 = inlined_call_operand.vmem [shape: f32[128,128], index: 3, kind: input, shape index: {}]   ;;  %s1468_s4 = inlined_call_operand.hbm [shape: f32[2,128,128], index: 4, kind: output, shape index: {}]  }
   0x1   :  { %1477 = sst [smem:[#allocation22_spill]] %s1464_s0 }
   0x2   :  { %9 = vsyncpa [#allocation4], 0 }
   0x3   :  { %11 = vsyncpa [#allocation4 + $0x1], 0 }
   0x4   :  { %12 = vsyncpa [#allocation7], 0 }
   0x5   :  { %14 = vsyncpa [#allocation7 + $0x1], 0 }
   0x6   :  { %15 = vsyncpa [#allocation5], 0 }
   0x7   :  { %17 = vsyncpa [#allocation5 + $0x1], 0  ;;  %s1052_s15 = smov 0   ;;  %s1054_s16 = smov 0  }
   0x8   :  { %s1056_s17 = smov 0   ;;  %s1058_s18 = smov 0  }
   0x9   :  { %s1060_s19 = smov 0   ;;  %s1062_s20 = smov 0  }
   0xa   :  { %s1064_s21 = smov 0   ;;  %s1066_s22 = smov 0  }
   0xb   :  { %s1068_s23 = smov 0   ;;  %s1070_s24 = smov 0  }
   0xc   :  { %s1072_s25 = smov 0   ;;  %s1074_s26 = smov 0  }
   0xd   :  { %s1076_s27 = smov 0   ;;  %s1078_s28 = smov 0  }
   0xe LB: > { %1478 = sst [smem:[#allocation12_spill]] %s968_s15  ;;  %s1469_s29 = sadd.s32 4294967295, %s1020_s28   ;;  %s1020_s28 = sphi %s1078_s28, %s23_s28   ;;  %s1016_s27 = sphi %s1076_s27, %s1509_s27   ;;  %s1012_s26 = sphi %s1074_s26, %s1521_s26   ;;  %s1008_s25 = sphi %s1072_s25, %s1507_s25   ;;  %s1004_s24 = sphi %s1070_s24, %s1520_s24   ;;  %s1000_s23 = sphi %s1068_s23, %s1519_s23   ;;  %s996_s22 = sphi %s1066_s22, %s1518_s22   ;;  %s992_s21 = sphi %s1064_s21, %s1517_s21   ;;  %s988_s20 = sphi %s1062_s20, %s1516_s20   ;;  %s984_s19 = sphi %s1060_s19, %s1515_s19   ;;  %s980_s18 = sphi %s1058_s18, %s1514_s18   ;;  %s976_s17 = sphi %s1056_s17, %s1513_s17   ;;  %s972_s16 = sphi %s1054_s16, %s1512_s16   ;;  %s968_s15 = sphi %s1052_s15, %s1511_s15  }
   0xf   : > { %1479 = sst [smem:[#allocation13_spill]] %s976_s17  ;;  %s32_s5 = sadd.s32 1, %s1012_s26 }
  0x10   : > { %1480 = sst [smem:[#allocation14_spill]] %s1000_s23  ;;  %s35_s6 = sadd.s32 1, %s1016_s27 }
  0x11   : > { %1481 = sst [smem:[#allocation15_spill]] %s1016_s27  ;;  %p33_p0 = scmp.ge.s32.totalorder %s32_s5, 2 }
  0x12   : > { %s44_s7 = sadd.s32 1, %s1000_s23  ;;  %p51_p1 = scmp.ne.s32.totalorder %s1000_s23, %s996_s22 }
  0x13   : > { %p52_p2 = scmp.eq.s32.totalorder %s1020_s28, 0  ;;  %s1523_s5 = smov (%p33_p0, %s32_s5), 0 }
  0x14   : > { %1482 = sst [smem:[#allocation16_spill]] %s1523_s5  ;;  %s1525_s6 = smov (!%p33_p0, %s35_s6), %s1016_s27 }
  0x15   : > { %s40_s8 = ssub.s32 %s1012_s26, %s1523_s5  ;;  %p1135_p3 = por %p52_p2, %p51_p1 }
  0x16   : > { %p37_p4 = scmp.ge.s32.totalorder %s1525_s6, 2  ;;  %p57_p5 = scmp.ne.s32.totalorder %s996_s22, %s992_s21 }
  0x17   : > { %p1142_p6 = scmp.eq.s32.totalorder %s1469_s29, 0  ;;  %p68_p7 = scmp.eq.s32.totalorder %s40_s8, 0 }
  0x18   : > { %s1527_s6 = smov (%p37_p4, %s1525_s6), 0  ;;  %s70_s12 = sadd.s32 1, %s988_s20 }
  0x19   : > { %1485 = sst [smem:[#allocation17_spill]] %s1527_s6  ;;  %p1150_p8 = por %p1142_p6, %p57_p5 }
  0x1a   : > { %s39_s13 = ssub.s32 %s1016_s27, %s1527_s6  ;;  %p77_p9 = scmp.ne.s32.totalorder %s988_s20, %s984_s19 }
  0x1b   : > { %s41_s14 = sor.u32 %s40_s8, %s39_s13  ;;  %p83_p10 = scmp.ne.s32.totalorder %s984_s19, %s980_s18 }
  0x1c   : > { %p42_p11 = scmp.eq.s32.totalorder %s41_s14, 0  ;;  %p1163_p12 = por %p77_p9, %p52_p2 }
  0x1d   : > { %s1168_s30 = scalar_select %p68_p7, %s988_s20, %s70_s12  }
  0x1e   : > { %s1171_s29 = scalar_select %p42_p11, %s1000_s23, %s44_s7  }
  0x1f   : > { %1488 = sst [smem:[#allocation18_spill]] %s1168_s30  ;;  %p1175_p13 = por %p83_p10, %p1142_p6 }
  0x20   : > { %1489 = sst [smem:[#allocation19_spill]] %s1171_s29  ;;  %p136_p0 = scmp.eq.s32.totalorder %s39_s13, 0 }
  0x21   : > { %s138_s18 = sadd.s32 1, %s976_s17  ;;  %p148_p1 = scmp.ne.s32.totalorder %s976_s17, %s972_s16 }
  0x22   : > { %s1183_s8 = scalar_select %p136_p0, %s976_s17, %s138_s18  }
  0x23   : > { %s1492_s14 = sadd.s32 4294967295, %s1020_s28   ;;  %p154_p4 = scmp.ne.s32.totalorder %s972_s16, %s968_s15 }
  0x24   : > { %1491 = sst [smem:[#allocation20_spill]] %s1183_s8  ;;  %p149_p2 = scmp.eq.s32.totalorder %s1492_s14, 3 }
  0x25   : > { %s1493_s12 = sadd.s32 4294967294, %s1020_s28   ;;  %p691_p6 = scmp.lt.s32.totalorder %s1020_s28, 4 }
  0x26   : > { %p155_p5 = scmp.eq.s32.totalorder %s1493_s12, 3  ;;  %p1191_p7 = por %p149_p2, %p148_p1 }
  0x27   : > { %s181_s13 = sand.u32 1, %s1000_s23   ;;  %s636_s14 = sshll.u32 %s1016_s27, 1 }
  0x28   : > { %p1196_p9 = por %p155_p5, %p154_p4  ;;  %s635_s18 = sshll.u32 %s181_s13, 2 }
  0x29   : > { %s189_s5 = sadd.s32 %s1012_s26, %s636_s14  ;;  %s185_s29 = scalar_lea.vmem [#allocation3], %s635_s18 }
  0x2a   : > { %s1495_s10 = scalar_select %p1196_p9, 1, 0 }
  0x2b   : > { %s195_s30 = sshll.u32 %s185_s29, 4  ;;  %s637_s12 = sshll.u32 %s189_s5, 2  ;;  %s196_s30 = int_to_ptr.vmem [resolvable:$true] %s195_s30 }
  0x2c   : > { %1496 = sst [smem:[#allocation21_spill]] %s1495_s10  ;;  %p681_p10 = pnand %p691_p6, %p1135_p3 }
  0x2d   : > { %s1497_s0 = sld [smem:[#allocation22_spill]]  ;;  %p1214_p11 = pnand %p691_p6, %p1163_p12 }
  0x2e   : > { %s182_s18 = scalar_lea.sflag [#allocation4], %s181_s13  ;;  %p641_p0 = scmp.ge.s32.totalorder %s1020_s28, 1 }
  0x2f   : > { %p222_p1 = scmp.lt.s32.totalorder %s1020_s28, 5  ;;  %s202_s29 = sand.u32 1, %s988_s20  }
  0x30   : > { %s638_s5 = sshll.u32 %s202_s29, 7  ;;  %s669_s17 = sshll.u32 %s1012_s26, 7 }
  0x31   : > { %p223_p2 = pnand %p641_p0, %p222_p1  ;;  %s206_s9 = scalar_lea.vmem [#allocation6], %s638_s5 }
  0x32   : > { %s214_s8 = sshll.u32 %s206_s9, 4  ;;  %s211_s21 = scalar_lea.hbm %s1465_s1, %s669_s17  ;;  %s215_s8 = int_to_ptr.vmem [resolvable:$true] %s214_s8 }
  0x33   : > { %s191_s15 = scalar_lea.hbm %s1497_s0, %s637_s12  ;;  %s212_s12 = sshll.u32 %s211_s21, 4  ;;  %s213_s12 = int_to_ptr.hbm [resolvable:$true] %s212_s12 }
  0x34   : > { %s193_s10 = sshll.u32 %s191_s15, 4  ;;  %s203_s0 = scalar_lea.sflag [#allocation7], %s202_s29  ;;  %s194_s10 = int_to_ptr.hbm [resolvable:$true] %s193_s10 }
  0x35   : > { %683 = dma.hbm_to_vmem [thread:$0]  (!%p681_p10), %s194_s10, 64, %s196_s30, %s182_s18  }
  0x36   : > { %s1022_s27 = smov 128   ;;  %s1023_s13 = smov 8  }
  0x37   : > { %686 = dma.hbm_to_vmem [thread:$0]  (!%p1214_p11), %s213_s12, 2048, %s215_s8, %s203_s0, %s1022_s27, %s1022_s27, %s1023_s13  }
  0x38   : > { %226 = sbr.rel (%p223_p2) target bundleno = 420 (0x1a4), region = 36  ;;  %s228_s30 = sand.u32 (!%p223_p2), 1, %s996_s22  }
  0x39   : > { %s1228_s10 = sshll.u32 (!%p223_p2), %s228_s30, 2  ;;  %s229_s18 = scalar_lea.sflag (!%p223_p2), [#allocation4], %s228_s30 }
  0x3a   : > { %s232_s5 = scalar_lea.vmem (!%p223_p2), [#allocation3], %s1228_s10 }
  0x3d   : > { %955 = dma.done.wait (%p1150_p8), %s229_s18, 64  }
  0x3e   : > { %957 = vsyncadd (%p1150_p8), %s229_s18, 4294967232  ;;  %s238_s29 = sand.u32 1, %s984_s19  }
  0x3f   : > { %s643_s17 = sshll.u32 %s238_s29, 7  ;;  %s239_s23 = scalar_lea.sflag [#allocation7], %s238_s29 }
  0x40   : > { %s1236_s0 = scalar_lea.vmem [#allocation6], %s643_s17 }
  0x41   : > { %959 = dma.done.wait (%p1175_p13), %s239_s23, 2048  }
  0x42   : > { %961 = vsyncadd (%p1175_p13), %s239_s23, 4294965248  ;;  %s270_s27 = sand.u32 1, %s972_s16   ;;  %p645_p3 = scmp.ne.s32.totalorder %s1004_s24, 0 }
  0x43   : > { %s644_s9 = sshll.u32 %s270_s27, 7 }
  0x44   : > { %s1245_s8 = scalar_lea.vmem [#allocation8], %s644_s9  ;;  %277 = sbr.rel (%p645_p3) target bundleno = 75 (0x4b), region = 48 }
  0x49   : > { %v1024_v0 = vmov 0.0  }
  0x4a   : > { %278 = vst [vmem:[#allocation2] sm:$0xf] %v1024_v0 }
  0x4b PF: > { %v296_v1 = vld [vmem:[%s1236_s0 + $0x78] sm:$0xff]  ;;  %v295_v2 = vld [vmem:[%s1236_s0 + $0x70] sm:$0xff]  ;;  %v294_v3 = vld [vmem:[%s1236_s0 + $0x68] sm:$0xff]  ;;  %p646_p8 = scmp.ne.s32.totalorder %s1004_s24, 1 }
  0x4c   : > { %297 = vmatpush.msra.mxu0 %v296_v1  ;;  %v293_v4 = vld [vmem:[%s1236_s0 + $0x60] sm:$0xff]  ;;  %v292_v5 = vld [vmem:[%s1236_s0 + $0x58] sm:$0xff]  ;;  %v291_v6 = vld [vmem:[%s1236_s0 + $0x50] sm:$0xff] }
  0x4d   : > { %v290_v7 = vld [vmem:[%s1236_s0 + $0x48] sm:$0xff]  ;;  %v289_v8 = vld [vmem:[%s1236_s0 + $0x40] sm:$0xff]  ;;  %v288_v9 = vld [vmem:[%s1236_s0 + $0x38] sm:$0xff] }
  0x4e   : > { %298 = vmatpush.msra.mxu0 %v295_v2  ;;  %v287_v10 = vld [vmem:[%s1236_s0 + $0x30] sm:$0xff]  ;;  %v286_v11 = vld [vmem:[%s1236_s0 + $0x28] sm:$0xff]  ;;  %v285_v12 = vld [vmem:[%s1236_s0 + $0x20] sm:$0xff] }
  0x4f   : > { %v284_v13 = vld [vmem:[%s1236_s0 + $0x18] sm:$0xff]  ;;  %v283_v14 = vld [vmem:[%s1236_s0 + $0x10] sm:$0xff]  ;;  %v282_v15 = vld [vmem:[%s1236_s0 + $0x8] sm:$0xff] }
  0x50   : > { %299 = vmatpush.msra.mxu0 %v294_v3  ;;  %v281_v16 = vld [vmem:[%s1236_s0] sm:$0xff]  ;;  %v280_v17 = vld [vmem:[%s232_s5] sm:$0xf] }
  0x51   : > { %v279_v18 = vld [vmem:[#allocation2] sm:$0xf] }
  0x52   : > { %300 = vmatpush.msra.mxu0 %v293_v4 }
  0x54   : > { %301 = vmatpush.msra.mxu0 %v292_v5 }
  0x56   : > { %302 = vmatpush.msra.mxu0 %v291_v6 }
  0x58   : > { %303 = vmatpush.msra.mxu0 %v290_v7 }
  0x5a   : > { %304 = vmatpush.msra.mxu0 %v289_v8 }
  0x5c   : > { %305 = vmatpush.msra.mxu0 %v288_v9 }
  0x5e   : > { %306 = vmatpush.msra.mxu0 %v287_v10 }
  0x60   : > { %307 = vmatpush.msra.mxu0 %v286_v11 }
  0x62   : > { %308 = vmatpush.msra.mxu0 %v285_v12 }
  0x64   : > { %309 = vmatpush.msra.mxu0 %v284_v13 }
  0x66   : > { %310 = vmatpush.msra.mxu0 %v283_v14 }
  0x68   : > { %311 = vmatpush.msra.mxu0 %v282_v15 }
  0x6a   : > { %312 = vmatpush.msra.mxu0 %v281_v16 }
  0x6b   : > { %313 = vmatmul.f32.vlgmr.msra.gmra.mxu0 %v280_v17 }
  0xe7   : > { %322 = sbr.rel (%p646_p8) target bundleno = 404 (0x194), region = 52 }
  0xe8   : > { %v314_v19 = vpop.f32.mrf.mxu0 }
  0xe9   : > { %v317_v20 = vadd.f32 %v314_v19, %v279_v18 }
  0xeb   : > { %318 = vst [vmem:[#allocation2] sm:$0xf] %v317_v20 }
  0xec   : > { %vm389_vm0 = vcmask 1043456   ;;  %v331_v22 = vld [vmem:[%s1466_s2 + $0x40] sm:$0xff]  ;;  %vm340_vm1 = vcmask 31744   ;;  %v332_v26 = vld [vmem:[%s1466_s2 + $0x48] sm:$0xff]  ;;  %v333_v30 = vld [vmem:[%s1466_s2 + $0x50] sm:$0xff] }
  0xed   : > { %v335_v23 = vld [vmem:[%s1466_s2 + $0x60] sm:$0xff]  ;;  %v336_v27 = vld [vmem:[%s1466_s2 + $0x68] sm:$0xff]  ;;  %v337_v31 = vld [vmem:[%s1466_s2 + $0x70] sm:$0xff] }
  0xee   : > { %v323_v24 = vld [vmem:[%s1466_s2] sm:$0xff]  ;;  %v324_v28 = vld [vmem:[%s1466_s2 + $0x8] sm:$0xff]  ;;  %v325_v32 = vld [vmem:[%s1466_s2 + $0x10] sm:$0xff] }
  0xef   : > { %v327_v25 = vld [vmem:[%s1466_s2 + $0x20] sm:$0xff]  ;;  %v328_v29 = vld [vmem:[%s1466_s2 + $0x28] sm:$0xff]  ;;  %v329_v33 = vld [vmem:[%s1466_s2 + $0x30] sm:$0xff] }
  0xf0   : > { %v334_v34 = vld [vmem:[%s1466_s2 + $0x58] sm:$0xff]  ;;  %v458_v38 = vld [vmem:[%s1467_s3] sm:$0xff]  ;;  %v459_v50 = vld [vmem:[%s1467_s3 + $0x8] sm:$0xff] }
  0xf1   : > { %v338_v35 = vld [vmem:[%s1466_s2 + $0x78] sm:$0xff]  ;;  %v462_v39 = vld [vmem:[%s1467_s3 + $0x20] sm:$0xff]  ;;  %v463_v51 = vld [vmem:[%s1467_s3 + $0x28] sm:$0xff] }
  0xf2   : > { %v339_v21 = vld [vmem:[#allocation2] sm:$0xf]  ;;  %v326_v36 = vld [vmem:[%s1466_s2 + $0x18] sm:$0xff]  ;;  %v467_v56 = vld [vmem:[%s1467_s3 + $0x48] sm:$0xff] }
  0xf3   : > { %672 = vmatpush.msk.msra.mxu2 %vm389_vm0, %v339_v21  ;;  %673 = vmatpush.msk.msra.mxu3 %vm389_vm0, %v339_v21  ;;  %v330_v37 = vld [vmem:[%s1466_s2 + $0x38] sm:$0xff]  ;;  %v466_v44 = vld [vmem:[%s1467_s3 + $0x40] sm:$0xff]  ;;  %v471_v57 = vld [vmem:[%s1467_s3 + $0x68] sm:$0xff] }
  0xf4   : > { %656 = vmatmul.msk.f32.vlgmr.msra.gmra.mxu2 %vm340_vm1, %v331_v22  ;;  %660 = vmatmul.msk.f32.vlgmr.msra.gmra.mxu3 %vm340_vm1, %v335_v23  ;;  %v470_v45 = vld [vmem:[%s1467_s3 + $0x60] sm:$0xff]  ;;  %v460_v62 = vld [vmem:[%s1467_s3 + $0x10] sm:$0xff]  ;;  %v461_v10 = vld [vmem:[%s1467_s3 + $0x18] sm:$0xff] }
  0xf5   : > { %647 = vmatpush.msk.msra.mxu0 %vm389_vm0, %v339_v21  ;;  %671 = vmatpush.msk.msra.mxu1 %vm389_vm0, %v339_v21  ;;  %v464_v63 = vld [vmem:[%s1467_s3 + $0x30] sm:$0xff]  ;;  %v465_v11 = vld [vmem:[%s1467_s3 + $0x38] sm:$0xff] }
  0xf6   : > { %648 = vmatmul.msk.f32.vlgmr.msra.gmra.mxu0 %vm340_vm1, %v323_v24  ;;  %652 = vmatmul.msk.f32.vlgmr.msra.gmra.mxu1 %vm340_vm1, %v327_v25  ;;  %v468_v4 = vld [vmem:[%s1467_s3 + $0x50] sm:$0xff]  ;;  %v469_v16 = vld [vmem:[%s1467_s3 + $0x58] sm:$0xff] }
  0xf7   : > { %v472_v5 = vld [vmem:[%s1467_s3 + $0x70] sm:$0xff]  ;;  %v473_v17 = vld [vmem:[%s1467_s3 + $0x78] sm:$0xff] }
  0xfc   : > { %657 = vmatmul.msk.f32.gmra.mxu2 %vm340_vm1, %v332_v26  ;;  %661 = vmatmul.msk.f32.gmra.mxu3 %vm340_vm1, %v336_v27 }
  0xfe   : > { %649 = vmatmul.msk.f32.gmra.mxu0 %vm340_vm1, %v324_v28  ;;  %653 = vmatmul.msk.f32.gmra.mxu1 %vm340_vm1, %v328_v29 }
 0x104   : > { %658 = vmatmul.msk.f32.gmra.mxu2 %vm340_vm1, %v333_v30  ;;  %662 = vmatmul.msk.f32.gmra.mxu3 %vm340_vm1, %v337_v31 }
 0x106   : > { %650 = vmatmul.msk.f32.gmra.mxu0 %vm340_vm1, %v325_v32  ;;  %654 = vmatmul.msk.f32.gmra.mxu1 %vm340_vm1, %v329_v33 }
 0x10c   : > { %659 = vmatmul.msk.f32.gmra.mxu2 %vm340_vm1, %v334_v34  ;;  %663 = vmatmul.msk.f32.gmra.mxu3 %vm340_vm1, %v338_v35 }
 0x10e   : > { %651 = vmatmul.msk.f32.gmra.mxu0 %vm340_vm1, %v326_v36  ;;  %655 = vmatmul.msk.f32.gmra.mxu1 %vm340_vm1, %v330_v37 }
 0x173   : > { %v410_v40 = vpop.f32.mrf.mxu0  ;;  %v422_v41 = vpop.f32.mrf.mxu1 }
 0x174   : > { %v474_v42 = vmul.f32 %v458_v38, %v410_v40  ;;  %v478_v43 = vmul.f32 %v462_v39, %v422_v41 }
 0x176   : > { %490 = vst [vmem:[%s1245_s8] sm:$0xff] %v474_v42 }
 0x177   : > { %494 = vst [vmem:[%s1245_s8 + $0x20] sm:$0xff] %v478_v43  ;;  %v434_v46 = vpop.f32.mrf.mxu2  ;;  %v446_v47 = vpop.f32.mrf.mxu3 }
 0x178   : > { %v482_v48 = vmul.f32 %v466_v44, %v434_v46  ;;  %v486_v49 = vmul.f32 %v470_v45, %v446_v47 }
 0x17a   : > { %498 = vst [vmem:[%s1245_s8 + $0x40] sm:$0xff] %v482_v48 }
 0x17b   : > { %502 = vst [vmem:[%s1245_s8 + $0x60] sm:$0xff] %v486_v49  ;;  %v413_v52 = vpop.f32.mrf.mxu0  ;;  %v425_v53 = vpop.f32.mrf.mxu1 }
 0x17c   : > { %v475_v54 = vmul.f32 %v459_v50, %v413_v52  ;;  %v479_v55 = vmul.f32 %v463_v51, %v425_v53 }
 0x17e   : > { %491 = vst [vmem:[%s1245_s8 + $0x8] sm:$0xff] %v475_v54 }
 0x17f   : > { %495 = vst [vmem:[%s1245_s8 + $0x28] sm:$0xff] %v479_v55  ;;  %v437_v58 = vpop.f32.mrf.mxu2  ;;  %v449_v59 = vpop.f32.mrf.mxu3 }
 0x180   : > { %v483_v60 = vmul.f32 %v467_v56, %v437_v58  ;;  %v487_v61 = vmul.f32 %v471_v57, %v449_v59 }
 0x182   : > { %499 = vst [vmem:[%s1245_s8 + $0x48] sm:$0xff] %v483_v60 }
 0x183   : > { %503 = vst [vmem:[%s1245_s8 + $0x68] sm:$0xff] %v487_v61  ;;  %v416_v0 = vpop.f32.mrf.mxu0  ;;  %v428_v1 = vpop.f32.mrf.mxu1 }
 0x184   : > { %v476_v2 = vmul.f32 %v460_v62, %v416_v0  ;;  %v480_v3 = vmul.f32 %v464_v63, %v428_v1 }
 0x186   : > { %492 = vst [vmem:[%s1245_s8 + $0x10] sm:$0xff] %v476_v2 }
 0x187   : > { %496 = vst [vmem:[%s1245_s8 + $0x30] sm:$0xff] %v480_v3  ;;  %v440_v6 = vpop.f32.mrf.mxu2  ;;  %v452_v7 = vpop.f32.mrf.mxu3 }
 0x188   : > { %v484_v8 = vmul.f32 %v468_v4, %v440_v6  ;;  %v488_v9 = vmul.f32 %v472_v5, %v452_v7 }
 0x18a   : > { %500 = vst [vmem:[%s1245_s8 + $0x50] sm:$0xff] %v484_v8 }
 0x18b   : > { %504 = vst [vmem:[%s1245_s8 + $0x70] sm:$0xff] %v488_v9  ;;  %v419_v12 = vpop.f32.mrf.mxu0  ;;  %v431_v13 = vpop.f32.mrf.mxu1 }
 0x18c   : > { %v477_v14 = vmul.f32 %v461_v10, %v419_v12  ;;  %v481_v15 = vmul.f32 %v465_v11, %v431_v13 }
 0x18e   : > { %493 = vst [vmem:[%s1245_s8 + $0x18] sm:$0xff] %v477_v14 }
 0x18f   : > { %497 = vst [vmem:[%s1245_s8 + $0x38] sm:$0xff] %v481_v15  ;;  %v443_v18 = vpop.f32.mrf.mxu2  ;;  %v455_v19 = vpop.f32.mrf.mxu3 }
 0x190   : > { %v485_v20 = vmul.f32 %v469_v16, %v443_v18  ;;  %v489_v21 = vmul.f32 %v473_v17, %v455_v19 }
 0x192   : > { %501 = vst [vmem:[%s1245_s8 + $0x58] sm:$0xff] %v485_v20 }
 0x193   : > { %505 = vst [vmem:[%s1245_s8 + $0x78] sm:$0xff] %v489_v21 }
 0x194 PF: > { %s670_s17 = sshll.u32 %s1008_s25, 7  ;;  %s519_s6 = sshll.u32 %s1245_s8, 4  ;;  %s520_s6 = int_to_ptr.vmem [resolvable:$true] %s519_s6 }
 0x195   : > { %s518_s9 = scalar_lea.hbm %s1468_s4, %s670_s17  ;;  %s507_s14 = scalar_lea.sflag [#allocation5], %s270_s27 }
 0x196   : > { %s521_s11 = sshll.u32 %s518_s9, 4  ;;  %s890_s25 = scalar_lea.hbm %s1468_s4, 256  ;;  %s522_s11 = int_to_ptr.hbm [resolvable:$true] %s521_s11 }
 0x197   : > { %s884_s15 = sshra.s32 %s522_s11, 4  ;;  %s885_s15 = int_to_ptr.hbm [resolvable:$true] %s884_s15 }
 0x198   : > { %s886_s21 = scalar_lea.hbm %s885_s15, 128  ;;  %p891_p5 = scmp.lt.s32.totalorder %s885_s15, %s1468_s4 }
 0x199   : > { %p887_p12 = scmp.ne.s32.totalorder %s885_s15, %s886_s21  ;;  %p892_p6 = scmp.lt.s32.totalorder %s890_s25, %s886_s21 }
 0x19b   : > { %p888_p13 = pnand %p887_p12, %p1191_p7  ;;  %p893_p10 = por %p892_p6, %p891_p5 }
 0x19d   : > { %p889_p4 = pneg %p888_p13 }
 0x19f   : > { %p894_p11 = pnand %p893_p10, %p889_p4 }
 0x1a1   : > { %897 = shalt.err (!%p894_p11)
}
 0x1a2   : > { %s1025_s27 = smov 128   ;;  %s1026_s8 = smov 8  }
 0x1a3   : > { %678 = dma.vmem_to_hbm [thread:$0]  (%p1191_p7), %s520_s6, 2048, %s522_s11, %s507_s14, %s1025_s27, %s1025_s27, %s1026_s8  }
 0x1a4 PF: > { %s1499_s10 = sld [smem:[#allocation12_spill]]  ;;  %p692_p0 = scmp.ge.s32.totalorder %s1020_s28, 2 }
 0x1a6   : > { %p688_p1 = pnand %p692_p0, %p1196_p9 }
 0x1a8   : > { %p689_p2 = pneg %p688_p1 }
 0x1aa   : > { %s536_s5 = sand.u32 1, %s1499_s10  }
 0x1ab   : > { %s537_s29 = scalar_lea.sflag [#allocation5], %s536_s5 }
 0x1ac   : > { %963 = dma.done.wait (%p689_p2), %s537_s29, 2048  }
 0x1ad   : > { %965 = vsyncadd (%p689_p2), %s537_s29, 4294965248  ;;  %s23_s28 = sadd.s32 1, %s1020_s28   ;;  %s1502_s7 = sld [smem:[#allocation13_spill]] }
 0x1ae   : > { %p1417_p3 = scmp.ge.s32.totalorder %s23_s28, 6   ;;  %s1503_s23 = sld [smem:[#allocation20_spill]] }
 0x1af   : > { %s1504_s0 = sld [smem:[#allocation18_spill]]  ;;  %s1511_s15 = smov %s972_s16 }
 0x1b0   : > { %s1505_s9 = sld [smem:[#allocation14_spill]]  ;;  %s1514_s18 = smov %s984_s19 }
 0x1b1   : > { %s1506_s6 = sld [smem:[#allocation19_spill]]  ;;  %s1515_s19 = smov %s988_s20 }
 0x1b2   : > { %s1507_s25 = sld [smem:[#allocation15_spill]]  ;;  %s1517_s21 = smov %s996_s22 }
 0x1b3   : > { %s1508_s11 = sld [smem:[#allocation16_spill]]  ;;  %s1512_s16 = smov %s1502_s7 }
 0x1b4   : > { %s1509_s27 = sld [smem:[#allocation17_spill]]  ;;  %s1513_s17 = smov %s1503_s23 }
 0x1b5   : > { %s1516_s20 = smov %s1504_s0  ;;  %s1520_s24 = smov %s1012_s26 }
 0x1b6   : > { %s1518_s22 = smov %s1505_s9  ;;  %22 = sbr.rel (!%p1417_p3) target bundleno = 14 (0xe), region = 102 }
 0x1b7   : > { %s1519_s23 = smov %s1506_s6 }
 0x1b9   : > { %s1521_s26 = smov %s1508_s11 }
 0x1bb   :  { %543 = vsyncpa [#allocation4], 1 }
 0x1bc   :  { %545 = vsyncpa [#allocation4 + $0x1], 1 }
 0x1bd   :  { %546 = vsyncpa [#allocation7], 1 }
 0x1be   :  { %548 = vsyncpa [#allocation7 + $0x1], 1 }
 0x1bf   :  { %549 = vsyncpa [#allocation5], 1 }
 0x1c0   :  { %551 = vsyncpa [#allocation5 + $0x1], 1 }

</bundles_post_ra>
